<compile_context>
chip_gen: v5e
topology: v5e:2x2
jax: 0.10.0
libtpu: 0.0.40
codegen_flags: <defaults>
</compile_context>

<pallas_src>
import functools

import jax
import jax.numpy as jnp
from jax.experimental import pallas as pl
from jax.experimental.pallas import tpu as pltpu


def _round_up(x, m):
    return (x + m - 1) // m * m


def _dual_conv_bn_relu_kernel(x_ref, w1_ref, s1_ref, b1_ref,
                              w2_ref, s2_ref, b2_ref,
                              o1_ref, o2_ref, *, kernel_size, padding2, c1):
    """One batch tile of fused (conv+BN+ReLU) x 2, intermediate kept in VMEM.

    x_ref:  (NB, L_pad, C0)        f32  activations, NLC, already 'same'-padded
    w1_ref: (K*C0, C1_pad)         bf16 stage-1 im2col weights (unscaled)
    s1_ref, b1_ref: (1, C1_pad)    f32  BN scale / shift for stage 1
    w2_ref: (K*C1, C2_pad)         bf16 stage-2 im2col weights (unscaled)
    s2_ref, b2_ref: (1, C2_pad)    f32  BN scale / shift for stage 2
    o1_ref: (NB, L1, C1_pad)       bf16 stage-1 output (lane-dense, NLC)
    o2_ref: (NB, L2, C2_pad)       bf16 stage-2 output (lane-dense, NLC)
    """
    nb, _, c0 = x_ref.shape
    l1 = o1_ref.shape[1]
    l2 = o2_ref.shape[1]
    k = kernel_size

    # ---- stage 1: in-VMEM im2col -> single MXU dot -> f32 BN + ReLU ----
    x = x_ref[...]                                                # (nb, L_pad, c0) f32
    xcat = jnp.concatenate([x[:, i:i + l1, :] for i in range(k)], axis=-1)
    xcat = xcat.reshape(nb * l1, c0 * k).astype(jnp.bfloat16)
    acc1 = jnp.dot(xcat, w1_ref[...], preferred_element_type=jnp.float32)
    y1 = jnp.maximum(acc1 * s1_ref[...] + b1_ref[...], 0.0)      # (nb*l1, C1_pad) f32
    o1_ref[...] = y1.reshape(nb, l1, -1).astype(o1_ref.dtype)

    # ---- stage 2 on the VMEM-resident intermediate (never touches HBM) ----
    y1v = y1[:, :c1].reshape(nb, l1, c1)                          # real channels only
    if padding2 > 0:
        z = jnp.zeros((nb, padding2, c1), jnp.float32)
        yp = jnp.concatenate([z, y1v, z], axis=1)
    else:
        yp = y1v
    ycat = jnp.concatenate([yp[:, i:i + l2, :] for i in range(k)], axis=-1)
    ycat = ycat.reshape(nb * l2, c1 * k).astype(jnp.bfloat16)
    acc2 = jnp.dot(ycat, w2_ref[...], preferred_element_type=jnp.float32)
    y2 = jnp.maximum(acc2 * s2_ref[...] + b2_ref[...], 0.0)
    o2_ref[...] = y2.reshape(nb, l2, -1).astype(o2_ref.dtype)


def fused_dual_conv1d_bn_relu(x, w1, g1, beta1, m1, v1, w2, g2, beta2, m2, v2,
                              *, padding=1, eps=1e-5, block_n=None):
    """Fused conv_stage1 -> conv_stage2 (both stride=1 BasicConv1d, eval-mode BN).

    x:  (N, C0, L) f32 (PyTorch NCL); w1: (C1, C0, K); w2: (C2, C1, K).
    Returns (y1, y2) as bf16 NLC tensors (N_pad, L, C_pad) — channel-padded to a
    lane-dense 128 multiple.  The crop to [:N, :, :C] and any NLC->NCL transpose
    is intentionally left to the consumer so it fuses with downstream ops.
    """
    N, C0, L = x.shape
    C1, c0_w1, K = w1.shape
    C2, c1_w2, K2 = w2.shape
    assert c0_w1 == C0 and c1_w2 == C1 and K2 == K
    L_pad = L + 2 * padding
    L1 = L_pad - K + 1                       # stage-1 output length
    L2 = L1 + 2 * padding - K + 1            # stage-2 output length
    C1_pad = _round_up(C1, 128)
    C2_pad = _round_up(C2, 128)

    # --- eval-mode BatchNorm as per-channel scale/shift, applied in-kernel (f32) ---
    s1 = g1 / jnp.sqrt(v1 + eps)
    sh1 = beta1 - m1 * s1
    s2 = g2 / jnp.sqrt(v2 + eps)
    sh2 = beta2 - m2 * s2

    def _vec(v, cpad):
        return jnp.pad(v, (0, cpad - v.shape[0])).reshape(1, cpad).astype(jnp.float32)

    s1v, sh1v = _vec(s1, C1_pad), _vec(sh1, C1_pad)
    s2v, sh2v = _vec(s2, C2_pad), _vec(sh2, C2_pad)

    # --- im2col weight matrices: (K*C_in, C_out_pad), bf16, unscaled ---
    w1m = jnp.transpose(w1, (2, 1, 0)).reshape(K * C0, C1)
    w1m = jnp.pad(w1m, ((0, 0), (0, C1_pad - C1))).astype(jnp.bfloat16)
    w2m = jnp.transpose(w2, (2, 1, 0)).reshape(K * C1, C2)
    w2m = jnp.pad(w2m, ((0, 0), (0, C2_pad - C2))).astype(jnp.bfloat16)

    # --- activations: NCL -> NLC + 'same' pad along L, one XLA fusion pre-kernel ---
    x_nlc = jnp.pad(jnp.transpose(x, (0, 2, 1)),
                    ((0, 0), (padding, padding), (0, 0))).astype(jnp.float32)

    # --- batch tiling: ~2048 output rows per step, but >=2 grid steps when N>1
    # (both v7x TensorCores), and a per-step footprint comfortably < 32 MiB.
    if block_n is None:
        block_n = max(1, min(N, 2048 // max(1, L1)))
        if N > 1:
            block_n = min(block_n, pl.cdiv(N, 2))
    NB = block_n
    N_pad = _round_up(N, NB)
    if N_pad != N:
        x_nlc = jnp.pad(x_nlc, ((0, N_pad - N), (0, 0), (0, 0)))
    grid = (N_pad // NB,)

    kernel = functools.partial(_dual_conv_bn_relu_kernel,
                               kernel_size=K, padding2=padding, c1=C1)

    # Real (unpadded) channel counts for flops; actual (padded, bf16) output bytes.
    flops = 2 * N * (L1 * K * C0 * C1 + L2 * K * C1 * C2)
    bytes_accessed = int(x_nlc.size * 4 + w1m.size * 2 + w2m.size * 2
                         + (s1v.size + sh1v.size + s2v.size + sh2v.size) * 4
                         + N_pad * (L1 * C1_pad + L2 * C2_pad) * 2)

    y1, y2 = pl.pallas_call(
        kernel,
        out_shape=(jax.ShapeDtypeStruct((N_pad, L1, C1_pad), jnp.bfloat16),
                   jax.ShapeDtypeStruct((N_pad, L2, C2_pad), jnp.bfloat16)),
        grid=grid,
        in_specs=[
            pl.BlockSpec((NB, L_pad, C0), lambda b: (b, 0, 0)),
            pl.BlockSpec((K * C0, C1_pad), lambda b: (0, 0)),
            pl.BlockSpec((1, C1_pad), lambda b: (0, 0)),
            pl.BlockSpec((1, C1_pad), lambda b: (0, 0)),
            pl.BlockSpec((K * C1, C2_pad), lambda b: (0, 0)),
            pl.BlockSpec((1, C2_pad), lambda b: (0, 0)),
            pl.BlockSpec((1, C2_pad), lambda b: (0, 0)),
        ],
        out_specs=(
            pl.BlockSpec((NB, L1, C1_pad), lambda b: (b, 0, 0)),
            pl.BlockSpec((NB, L2, C2_pad), lambda b: (b, 0, 0)),
        ),
        compiler_params=pltpu.CompilerParams(
            dimension_semantics=("parallel",),          # shard batch tiles across TCs
            vmem_limit_bytes=32 * 1024 * 1024),         # raise v5e's 16 MiB default
        cost_estimate=pl.CostEstimate(flops=flops, transcendentals=0,
                                      bytes_accessed=bytes_accessed),
    )(x_nlc, w1m, s1v, sh1v, w2m, s2v, sh2v)

    return y1, y2


def _conv_bn_relu_ref(x, weight, gamma, beta, mean, var, *, padding=0, eps=1e-5):
    y = jax.lax.conv_general_dilated(
        x, weight, window_strides=(1,), padding=[(padding, padding)],
        dimension_numbers=("NCH", "OIH", "NCH"),
        precision=jax.lax.Precision.HIGHEST)
    scale = (gamma / jnp.sqrt(var + eps))[None, :, None]
    shift = (beta - mean * gamma / jnp.sqrt(var + eps))[None, :, None]
    return jnp.maximum(y * scale + shift, 0.0)


if __name__ == "__main__":
    key = jax.random.PRNGKey(0)
    keys = jax.random.split(key, 11)

    # Module-consistent small shapes: MutanLayer_conv(set_channels=[8,16,32],
    # part_dim=16).  The three modalities share conv weights, so the wrapper
    # would stack structural/visual/textual along the batch axis -> N = 3*batch.
    set_channels = (8, 16, 32)
    part_dim = 16
    C0, C1, C2 = set_channels
    K, padding = 3, 1
    batch = 2
    N = 3 * batch

    x = jax.random.normal(keys[0], (N, C0, part_dim), dtype=jnp.float32)
    w1 = jax.random.normal(keys[1], (C1, C0, K), dtype=jnp.float32) * 0.1
    g1 = 1.0 + 0.1 * jax.random.normal(keys[2], (C1,), dtype=jnp.float32)
    b1 = 0.1 * jax.random.normal(keys[3], (C1,), dtype=jnp.float32)
    m1 = 0.1 * jax.random.normal(keys[4], (C1,), dtype=jnp.float32)
    v1 = jnp.abs(jax.random.normal(keys[5], (C1,), dtype=jnp.float32)) + 0.5
    w2 = jax.random.normal(keys[6], (C2, C1, K), dtype=jnp.float32) * 0.1
    g2 = 1.0 + 0.1 * jax.random.normal(keys[7], (C2,), dtype=jnp.float32)
    b2 = 0.1 * jax.random.normal(keys[8], (C2,), dtype=jnp.float32)
    m2 = 0.1 * jax.random.normal(keys[9], (C2,), dtype=jnp.float32)
    v2 = jnp.abs(jax.random.normal(keys[10], (C2,), dtype=jnp.float32)) + 0.5

    # Heuristic gives NB=3 -> grid=(2,): exercises the multi-step, double-buffered
    # pipeline and the two-TensorCore sharding path.
    y1p, y2p = fused_dual_conv1d_bn_relu(x, w1, g1, b1, m1, v1,
                                         w2, g2, b2, m2, v2, padding=padding)
    y1p, y2p = jax.block_until_ready((y1p, y2p))

    ref1 = _conv_bn_relu_ref(x, w1, g1, b1, m1, v1, padding=padding)
    ref2 = _conv_bn_relu_ref(ref1, w2, g2, b2, m2, v2, padding=padding)

    # Consumer-side crop of padded channels + NLC->NCL (only for reference parity).
    y1 = jnp.transpose(y1p[:N, :, :C1].astype(jnp.float32), (0, 2, 1))
    y2 = jnp.transpose(y2p[:N, :, :C2].astype(jnp.float32), (0, 2, 1))

    assert y1.shape == ref1.shape and y2.shape == ref2.shape
    # bf16 MXU inputs / bf16 outputs with f32 accumulation -> loosened tolerance.
    assert jnp.allclose(y1, ref1, atol=5e-2, rtol=5e-2)
    assert jnp.allclose(y2, ref2, atol=5e-2, rtol=5e-2)

    print("KERNEL_OK")
</pallas_src>

<mosaic_0001>
module attributes {stable_mosaic.version = 11 : i64} {
  func.func @_dual_conv_bn_relu_kernel(%arg0: i32, %arg1: memref<3x18x8xf32, #tpu.memory_space<vmem>>, %arg2: memref<24x128xbf16, #tpu.memory_space<vmem>>, %arg3: memref<1x128xf32, #tpu.memory_space<vmem>>, %arg4: memref<1x128xf32, #tpu.memory_space<vmem>>, %arg5: memref<48x128xbf16, #tpu.memory_space<vmem>>, %arg6: memref<1x128xf32, #tpu.memory_space<vmem>>, %arg7: memref<1x128xf32, #tpu.memory_space<vmem>>, %arg8: memref<3x16x128xbf16, #tpu.memory_space<vmem>>, %arg9: memref<3x16x128xbf16, #tpu.memory_space<vmem>>) attributes {dimension_semantics = [#tpu.dimension_semantics<parallel>], iteration_bounds = array<i64: 2>, scalar_prefetch = 0 : i64, scratch_operands = 0 : i64, tpu.core_type = #tpu.core_type<tc>, window_params = [{transform_indices = @transform_0, window_bounds = array<i64: 3, 18, 8>}, {pipeline_mode = #tpu.pipeline_mode<synchronous>, transform_indices = @transform_1, window_bounds = array<i64: 24, 128>}, {pipeline_mode = #tpu.pipeline_mode<synchronous>, transform_indices = @transform_2, window_bounds = array<i64: 1, 128>}, {pipeline_mode = #tpu.pipeline_mode<synchronous>, transform_indices = @transform_3, window_bounds = array<i64: 1, 128>}, {pipeline_mode = #tpu.pipeline_mode<synchronous>, transform_indices = @transform_4, window_bounds = array<i64: 48, 128>}, {pipeline_mode = #tpu.pipeline_mode<synchronous>, transform_indices = @transform_5, window_bounds = array<i64: 1, 128>}, {pipeline_mode = #tpu.pipeline_mode<synchronous>, transform_indices = @transform_6, window_bounds = array<i64: 1, 128>}, {transform_indices = @transform_7, window_bounds = array<i64: 3, 16, 128>}, {transform_indices = @transform_8, window_bounds = array<i64: 3, 16, 128>}]} {
    %c0 = arith.constant 0 : index
    %c0_0 = arith.constant 0 : index
    %c0_1 = arith.constant 0 : index
    %0 = vector.load %arg1[%c0, %c0_0, %c0_1] : memref<3x18x8xf32, #tpu.memory_space<vmem>>, vector<3x18x8xf32>
    %1 = vector.extract_strided_slice %0 {offsets = [0, 0, 0], sizes = [3, 16, 8], strides = [1, 1, 1]} : vector<3x18x8xf32> to vector<3x16x8xf32>
    %2 = vector.extract_strided_slice %0 {offsets = [0, 1, 0], sizes = [3, 16, 8], strides = [1, 1, 1]} : vector<3x18x8xf32> to vector<3x16x8xf32>
    %3 = vector.extract_strided_slice %0 {offsets = [0, 2, 0], sizes = [3, 16, 8], strides = [1, 1, 1]} : vector<3x18x8xf32> to vector<3x16x8xf32>
    %4 = tpu.concatenate %1, %2, %3 in 2 : vector<3x16x8xf32>, vector<3x16x8xf32>, vector<3x16x8xf32> -> vector<3x16x24xf32>
    %5 = vector.shape_cast %4 : vector<3x16x24xf32> to vector<48x24xf32>
    %6 = arith.truncf %5 : vector<48x24xf32> to vector<48x24xbf16>
    %c0_2 = arith.constant 0 : index
    %c0_3 = arith.constant 0 : index
    %7 = vector.load %arg2[%c0_2, %c0_3] : memref<24x128xbf16, #tpu.memory_space<vmem>>, vector<24x128xbf16>
    %cst = arith.constant dense<0.000000e+00> : vector<48x128xf32>
    %8 = tpu.matmul %6, %7, %cst {dimension_numbers = #tpu.dot_dimension_numbers<[1], [0], [0], [1], [0, 0, 1, 1], [], []>} : vector<48x24xbf16>, vector<24x128xbf16>, vector<48x128xf32> -> vector<48x128xf32>
    %c0_4 = arith.constant 0 : index
    %c0_5 = arith.constant 0 : index
    %9 = vector.load %arg3[%c0_4, %c0_5] : memref<1x128xf32, #tpu.memory_space<vmem>>, vector<1x128xf32>
    %10 = vector.broadcast %9 : vector<1x128xf32> to vector<48x128xf32>
    %11 = arith.mulf %8, %10 : vector<48x128xf32>
    %c0_6 = arith.constant 0 : index
    %c0_7 = arith.constant 0 : index
    %12 = vector.load %arg4[%c0_6, %c0_7] : memref<1x128xf32, #tpu.memory_space<vmem>>, vector<1x128xf32>
    %13 = vector.broadcast %12 : vector<1x128xf32> to vector<48x128xf32>
    %14 = arith.addf %11, %13 : vector<48x128xf32>
    %cst_8 = arith.constant 0.000000e+00 : f32
    %15 = vector.broadcast %cst_8 : f32 to vector<48x128xf32>
    %16 = arith.maximumf %14, %15 : vector<48x128xf32>
    %17 = vector.shape_cast %16 : vector<48x128xf32> to vector<3x16x128xf32>
    %18 = arith.truncf %17 : vector<3x16x128xf32> to vector<3x16x128xbf16>
    %c0_9 = arith.constant 0 : index
    %c0_10 = arith.constant 0 : index
    %c0_11 = arith.constant 0 : index
    %19 = vector.load %arg8[%c0_9, %c0_10, %c0_11] : memref<3x16x128xbf16, #tpu.memory_space<vmem>>, vector<3x16x128xbf16>
    tpu.vector_store %arg8[%c0_9, %c0_10, %c0_11], %18 {strides = array<i32>} : memref<3x16x128xbf16, #tpu.memory_space<vmem>>, vector<3x16x128xbf16>,
    %20 = vector.extract_strided_slice %16 {offsets = [0, 0], sizes = [48, 16], strides = [1, 1]} : vector<48x128xf32> to vector<48x16xf32>
    %21 = vector.shape_cast %20 : vector<48x16xf32> to vector<3x16x16xf32>
    %cst_12 = arith.constant 0.000000e+00 : f32
    %22 = vector.broadcast %cst_12 : f32 to vector<3x1x16xf32>
    %23 = tpu.concatenate %22, %21, %22 in 1 : vector<3x1x16xf32>, vector<3x16x16xf32>, vector<3x1x16xf32> -> vector<3x18x16xf32>
    %24 = vector.extract_strided_slice %23 {offsets = [0, 0, 0], sizes = [3, 16, 16], strides = [1, 1, 1]} : vector<3x18x16xf32> to vector<3x16x16xf32>
    %25 = vector.extract_strided_slice %23 {offsets = [0, 1, 0], sizes = [3, 16, 16], strides = [1, 1, 1]} : vector<3x18x16xf32> to vector<3x16x16xf32>
    %26 = vector.extract_strided_slice %23 {offsets = [0, 2, 0], sizes = [3, 16, 16], strides = [1, 1, 1]} : vector<3x18x16xf32> to vector<3x16x16xf32>
    %27 = tpu.concatenate %24, %25, %26 in 2 : vector<3x16x16xf32>, vector<3x16x16xf32>, vector<3x16x16xf32> -> vector<3x16x48xf32>
    %28 = vector.shape_cast %27 : vector<3x16x48xf32> to vector<48x48xf32>
    %29 = arith.truncf %28 : vector<48x48xf32> to vector<48x48xbf16>
    %c0_13 = arith.constant 0 : index
    %c0_14 = arith.constant 0 : index
    %30 = vector.load %arg5[%c0_13, %c0_14] : memref<48x128xbf16, #tpu.memory_space<vmem>>, vector<48x128xbf16>
    %cst_15 = arith.constant dense<0.000000e+00> : vector<48x128xf32>
    %31 = tpu.matmul %29, %30, %cst_15 {dimension_numbers = #tpu.dot_dimension_numbers<[1], [0], [0], [1], [0, 0, 1, 1], [], []>} : vector<48x48xbf16>, vector<48x128xbf16>, vector<48x128xf32> -> vector<48x128xf32>
    %c0_16 = arith.constant 0 : index
    %c0_17 = arith.constant 0 : index
    %32 = vector.load %arg6[%c0_16, %c0_17] : memref<1x128xf32, #tpu.memory_space<vmem>>, vector<1x128xf32>
    %33 = vector.broadcast %32 : vector<1x128xf32> to vector<48x128xf32>
    %34 = arith.mulf %31, %33 : vector<48x128xf32>
    %c0_18 = arith.constant 0 : index
    %c0_19 = arith.constant 0 : index
    %35 = vector.load %arg7[%c0_18, %c0_19] : memref<1x128xf32, #tpu.memory_space<vmem>>, vector<1x128xf32>
    %36 = vector.broadcast %35 : vector<1x128xf32> to vector<48x128xf32>
    %37 = arith.addf %34, %36 : vector<48x128xf32>
    %cst_20 = arith.constant 0.000000e+00 : f32
    %38 = vector.broadcast %cst_20 : f32 to vector<48x128xf32>
    %39 = arith.maximumf %37, %38 : vector<48x128xf32>
    %40 = vector.shape_cast %39 : vector<48x128xf32> to vector<3x16x128xf32>
    %41 = arith.truncf %40 : vector<3x16x128xf32> to vector<3x16x128xbf16>
    %c0_21 = arith.constant 0 : index
    %c0_22 = arith.constant 0 : index
    %c0_23 = arith.constant 0 : index
    %42 = vector.load %arg9[%c0_21, %c0_22, %c0_23] : memref<3x16x128xbf16, #tpu.memory_space<vmem>>, vector<3x16x128xbf16>
    tpu.vector_store %arg9[%c0_21, %c0_22, %c0_23], %41 {strides = array<i32>} : memref<3x16x128xbf16, #tpu.memory_space<vmem>>, vector<3x16x128xbf16>,
    return
  }
  func.func @transform_0(%arg0: i32) -> (i32, i32, i32) {
    %c0_i32 = arith.constant 0 : i32
    %c0_i32_0 = arith.constant 0 : i32
    %c0_i32_1 = arith.constant 0 : i32
    return %arg0, %c0_i32, %c0_i32_0 : i32, i32, i32
  }
  func.func @transform_1(%arg0: i32) -> (i32, i32) {
    %c0_i32 = arith.constant 0 : i32
    %c0_i32_0 = arith.constant 0 : i32
    %c0_i32_1 = arith.constant 0 : i32
    return %c0_i32, %c0_i32_0 : i32, i32
  }
  func.func @transform_2(%arg0: i32) -> (i32, i32) {
    %c0_i32 = arith.constant 0 : i32
    %c0_i32_0 = arith.constant 0 : i32
    %c0_i32_1 = arith.constant 0 : i32
    return %c0_i32, %c0_i32_0 : i32, i32
  }
  func.func @transform_3(%arg0: i32) -> (i32, i32) {
    %c0_i32 = arith.constant 0 : i32
    %c0_i32_0 = arith.constant 0 : i32
    %c0_i32_1 = arith.constant 0 : i32
    return %c0_i32, %c0_i32_0 : i32, i32
  }
  func.func @transform_4(%arg0: i32) -> (i32, i32) {
    %c0_i32 = arith.constant 0 : i32
    %c0_i32_0 = arith.constant 0 : i32
    %c0_i32_1 = arith.constant 0 : i32
    return %c0_i32, %c0_i32_0 : i32, i32
  }
  func.func @transform_5(%arg0: i32) -> (i32, i32) {
    %c0_i32 = arith.constant 0 : i32
    %c0_i32_0 = arith.constant 0 : i32
    %c0_i32_1 = arith.constant 0 : i32
    return %c0_i32, %c0_i32_0 : i32, i32
  }
  func.func @transform_6(%arg0: i32) -> (i32, i32) {
    %c0_i32 = arith.constant 0 : i32
    %c0_i32_0 = arith.constant 0 : i32
    %c0_i32_1 = arith.constant 0 : i32
    return %c0_i32, %c0_i32_0 : i32, i32
  }
  func.func @transform_7(%arg0: i32) -> (i32, i32, i32) {
    %c0_i32 = arith.constant 0 : i32
    %c0_i32_0 = arith.constant 0 : i32
    %c0_i32_1 = arith.constant 0 : i32
    return %arg0, %c0_i32, %c0_i32_0 : i32, i32, i32
  }
  func.func @transform_8(%arg0: i32) -> (i32, i32, i32) {
    %c0_i32 = arith.constant 0 : i32
    %c0_i32_0 = arith.constant 0 : i32
    %c0_i32_1 = arith.constant 0 : i32
    return %arg0, %c0_i32, %c0_i32_0 : i32, i32, i32
  }
}

</mosaic_0001>

<bundles_post_ra>
// kernel: tpu_custom_call.1
= control target key start
LH: loop header
LB: loop body
LE: loop exit
PB: predicated region body
PF: predicated region fallthrough
CT: control target
= control target key end

     0   :  { %s1480_s0 = inlined_call_operand.vmem [shape: f32[6,18,8], index: 0, kind: input, shape index: {}]   ;;  %s1481_s1 = inlined_call_operand.vmem [shape: bf16[24,128], index: 1, kind: input, shape index: {}]   ;;  %s1482_s2 = inlined_call_operand.vmem [shape: f32[1,128], index: 2, kind: input, shape index: {}]   ;;  %s1483_s3 = inlined_call_operand.vmem [shape: f32[1,128], index: 3, kind: input, shape index: {}]   ;;  %s1484_s4 = inlined_call_operand.vmem [shape: bf16[48,128], index: 4, kind: input, shape index: {}]   ;;  %s1485_s5 = inlined_call_operand.vmem [shape: f32[1,128], index: 5, kind: input, shape index: {}]   ;;  %s1486_s6 = inlined_call_operand.vmem [shape: f32[1,128], index: 6, kind: input, shape index: {}]   ;;  %s1487_s7 = inlined_call_operand.hbm [shape: bf16[6,16,128], index: 7, kind: output, shape index: {0}]   ;;  %s1488_s8 = inlined_call_operand.hbm [shape: bf16[6,16,128], index: 8, kind: output, shape index: {1}]  }
   0x1   :  { %1490 = sst [smem:[#allocation8_spill]] %s1480_s0 }
   0x2   :  { %1491 = sst [smem:[#allocation9_spill]] %s1481_s1 }
   0x3   :  { %14 = vsyncpa [#allocation3], 0 }
   0x4   :  { %16 = vsyncpa [#allocation3 + $0x1], 0 }
   0x5   :  { %17 = vsyncpa [#allocation5], 0 }
   0x6   :  { %19 = vsyncpa [#allocation5 + $0x1], 0  ;;  %s1210_s27 = smov 0   ;;  %s1212_s28 = smov 0  }
   0x7   :  { %s1214_s29 = smov 0   ;;  %s1216_s30 = smov 0  }
   0x8 LB: > { %s1231_s9 = sadd.s32 4294967295, %s1158_s30   ;;  %s864_s10 = sadd.s32 4294967294, %s1158_s30   ;;  %s1158_s30 = sphi %s1216_s30, %s1500_s30   ;;  %s1154_s29 = sphi %s1214_s29, %s1499_s29   ;;  %s1150_s28 = sphi %s1212_s28, %s1498_s28   ;;  %s1146_s27 = sphi %s1210_s27, %s1497_s27  }
   0x9   : > { %s1235_s11 = sadd.s32 1, %s1158_s30   ;;  %s184_s12 = sadd.s32 1, %s1154_s29 }
   0xa   : > { %s181_s13 = ssub.s32 %s1158_s30, %s1235_s11  ;;  %p194_p0 = scmp.ne.s32.totalorder %s1154_s29, %s1150_s28 }
   0xb   : > { %p182_p1 = scmp.eq.s32.totalorder %s181_s13, 0  ;;  %p195_p2 = scmp.eq.s32.totalorder %s1231_s9, 1 }
   0xc   : > { %p200_p3 = scmp.ne.s32.totalorder %s1150_s28, %s1146_s27  ;;  %p201_p4 = scmp.eq.s32.totalorder %s864_s10, 1 }
   0xd   : > { %s1246_s14 = scalar_select %p182_p1, %s1154_s29, %s184_s12  }
   0xe   : > { %p1248_p5 = por %p195_p2, %p194_p0  ;;  %p1252_p6 = por %p201_p4, %p200_p3 }
   0xf   : > { %p867_p7 = scmp.ge.s32.totalorder %s1158_s30, 1  ;;  %p273_p8 = scmp.lt.s32.totalorder %s1158_s30, 3 }
  0x11   : > { %p274_p9 = pnand %p867_p7, %p273_p8 }
  0x12   : > { %s313_s17 = smul.u32 (!%p274_p9), 3, %s1231_s9  ;;  %s1494_s0 = sld [smem:[#allocation8_spill]] (!%p274_p9) }
  0x13   : > { %277 = sbr.rel (%p274_p9) target bundleno = 606 (0x25e), region = 48  ;;  %s1160_s22 = smov (!%p274_p9), 8  }
  0x14   : > { %p314_p10 = scmp.lt.s32.totalorder (!%p274_p9), %s313_s17, 5  ;;  %s1161_s23 = smov (!%p274_p9), 16  }
  0x15   : > { %s1495_s1 = sld [smem:[#allocation9_spill]] (!%p274_p9)  ;;  %s1330_s19 = sand.u32 (!%p274_p9), 1, %s1150_s28  }
  0x16   : > { %s1489_s20 = smul.u32 (!%p274_p9), 24, %s1330_s19  ;;  %s730_s26 = scalar_lea.sflag (!%p274_p9), [#allocation3], %s1330_s19 }
  0x18   : > { %s1502_s17 = smov (!%p314_p10, %s313_s17), 5  ;;  %vm341_vm0 = vcmask 1046528   ;;  %vm375_vm1 = vcmask 1045504   ;;  %vm448_vm2 = vcmask 1043456   ;;  %vm409_vm3 = vcmask 64512  }
  0x19   : > { %s950_s18 = smul.u32 24, %s1502_s17  ;;  %vm416_vm4 = vcmask 130048   ;;  %vm438_vm5 = vcmask 195584   ;;  %vm520_vm6 = vcmask 1040384   ;;  %vm623_vm7 = vcmask 261120  }
  0x1a   : > { %vm657_vm8 = vcmask 392192   ;;  %s939_s17 = smul.u32 24, %s1231_s9 }
  0x1b   : > { %s318_s21 = scalar_lea.vmem %s1494_s0, %s950_s18  ;;  %v428_v45 = vld [vmem:[%s1495_s1 + $0x8] sm:$0xf]  ;;  %v897_v49 = vld [vmem:[%s1495_s1] sm:$0xff] }
  0x1c   : > { %v1262_v0 = vld [vmem:[%s318_s21 + $0x18] sm:$0xff]  ;;  %v1264_v1 = vld [vmem:[%s318_s21 + $0x20] sm:$0xff]  ;;  %v328_v2 = vld [vmem:[%s318_s21 + $0x28] sm:$0x3]  ;;  %v434_v46 = vunpack.c.l.b16 %v428_v45  ;;  %s747_s24 = scalar_lea.hbm %s1487_s7, %s939_s17 }
  0x1d   : > { %v347_v3 = vrot.slane %v1262_v0, 1  ;;  %v348_v4 = vrot.slane %v1264_v1, 1  ;;  %v350_v5 = vrot.slane %v328_v2, 1  ;;  %v1268_v6 = vld [vmem:[%s318_s21] sm:$0xff]  ;;  %v324_v7 = vld [vmem:[%s318_s21 + $0x8] sm:$0xff]  ;;  %v384_v8 = vrot.slane %v328_v2, 2 }
  0x1e   : > { %v325_v9 = vld [vmem:[%s318_s21 + $0x10] sm:$0x3]  ;;  %v342_v10 = vrot.slane %v1268_v6, 1  ;;  %v343_v11 = vrot.slane %v324_v7, 1  ;;  %v381_v12 = vrot.slane %v1262_v0, 2  ;;  %v382_v16 = vrot.slane %v1264_v1, 2 }
  0x1f   : > { %v349_v13 = vsel %vm341_vm0, %v347_v3, %v348_v4  ;;  %v351_v14 = vsel %vm341_vm0, %v348_v4, %v350_v5  ;;  %v345_v15 = vrot.slane %v325_v9, 1  ;;  %v1275_v17 = vld [vmem:[%s318_s21 + $0x30] sm:$0xff]  ;;  %v1277_v18 = vld [vmem:[%s318_s21 + $0x38] sm:$0xff]  ;;  %v331_v19 = vld [vmem:[%s318_s21 + $0x40] sm:$0x3]  ;;  %v379_v23 = vrot.slane %v325_v9, 2 }
  0x20   : > { %v1000_v20 = vpack.i.bf16 %v351_v14, %v349_v13  ;;  %v344_v21 = vsel %vm341_vm0, %v342_v10, %v343_v11  ;;  %v376_v24 = vrot.slane %v1268_v6, 2  ;;  %v377_v25 = vrot.slane %v324_v7, 2  ;;  %s1339_s21 = scalar_lea.vmem [#allocation2], %s1489_s20  ;;  %s750_s25 = sshll.u32 %s747_s24, 4  ;;  %s751_s25 = int_to_ptr.hbm [resolvable:$true] %s750_s25 }
  0x21   : > { %v346_v22 = vsel %vm341_vm0, %v343_v11, %v345_v15  ;;  %v352_v27 = vrot.slane %v1275_v17, 1  ;;  %v353_v28 = vrot.slane %v1277_v18, 1  ;;  %v355_v29 = vrot.slane %v331_v19, 1  ;;  %s1078_s10 = sshra.s32 %s751_s25, 4  ;;  %s1079_s10 = int_to_ptr.hbm [resolvable:$true] %s1078_s10 }
  0x22   : > { %1001 = vrot.lane.b32.xlu0 %v1000_v20, %s1160_s22  ;;  %v1020_v26 = vpack.i.bf16 %v346_v22, %v344_v21  ;;  %v383_v30 = vsel %vm375_vm1, %v381_v12, %v382_v16  ;;  %v385_v31 = vsel %vm375_vm1, %v382_v16, %v384_v8  ;;  %v389_v32 = vrot.slane %v331_v19, 2  ;;  %v1060_v21 = vld [vmem:[%s1482_s2] ss:$0 sm:$0xff]  ;;  %s1080_s12 = scalar_lea.hbm %s1079_s10, 24  ;;  %p1085_p0 = scmp.lt.s32.totalorder %s1079_s10, %s1487_s7 }
  0x23   : > { %v354_v33 = vsel %vm341_vm0, %v352_v27, %v353_v28  ;;  %v356_v34 = vsel %vm341_vm0, %v353_v28, %v355_v29  ;;  %v386_v35 = vrot.slane %v1275_v17, 2  ;;  %v387_v36 = vrot.slane %v1277_v18, 2  ;;  %v1061_v22 = vld [vmem:[%s1483_s3] ss:$0 sm:$0xff]  ;;  %p1081_p11 = scmp.ne.s32.totalorder %s1079_s10, %s1080_s12 }
  0x24   : > { %1021 = vrot.lane.b32.xlu2 %v1020_v26, %s1160_s22  ;;  %v378_v37 = vsel %vm375_vm1, %v376_v24, %v377_v25  ;;  %v380_v38 = vsel %vm375_vm1, %v377_v25, %v379_v23  ;;  %v1010_v39 = vpack.i.bf16 %v356_v34, %v354_v33  ;;  %v1005_v40 = vpack.i.bf16 %v385_v31, %v383_v30 }
  0x25   : > { %v1025_v41 = vpack.i.bf16 %v380_v38, %v378_v37  ;;  %v388_v42 = vsel %vm375_vm1, %v386_v35, %v387_v36  ;;  %v390_v43 = vsel %vm375_vm1, %v387_v36, %v389_v32  ;;  %v436_v47 = vpack.c.b16 %v434_v46, %v434_v46  ;;  %p1082_p12 = pnand %p1081_p11, %p1248_p5 }
  0x26   : > { %1011 = vrot.lane.b32.xlu1 %v1010_v39, %s1160_s22  ;;  %v1015_v44 = vpack.i.bf16 %v390_v43, %v388_v42  ;;  %s1162_s22 = smov 32  }
  0x27   : > { %v450_v48 = vsel %vm448_vm2, %v436_v47, 0  ;;  %p1083_p13 = pneg %p1082_p12 }
  0x28   : > { %458 = vmatpush.bf16.msra.mxu0 %v450_v48  ;;  %941 = vmatpush.bf16.msra.mxu3 %v450_v48 }
  0x2a   : > { %1006 = vrot.lane.b32.xlu0 %v1005_v40, %s1161_s23 }
  0x2c   : > { %1026 = vrot.lane.b32.xlu2 %v1025_v41, %s1161_s23  ;;  %459 = vmatpush.bf16.msra.mxu0 %v897_v49 }
  0x2d   : > { %942 = vmatpush.bf16.msra.mxu3 %v897_v49 }
  0x2e   : > { %1016 = vrot.lane.b32.xlu1 %v1015_v44, %s1161_s23 }
  0x7e   : > { %v1022_v50 = vpop.permute.xlu2 %1021 }
  0x7f   : > { %v1024_v51 = vunpack.i.h.bf16 %v1022_v50  ;;  %v1023_v52 = vunpack.i.l.bf16 %v1022_v50 }
  0x81   : > { %v411_v53 = vsel %vm409_vm3, %v324_v7, %v1024_v51  ;;  %v410_v54 = vsel %vm409_vm3, %v1268_v6, %v1023_v52 }
  0x86   : > { %v1027_v55 = vpop.permute.xlu2 %1026 }
  0x87   : > { %v1029_v56 = vunpack.i.h.bf16 %v1027_v55  ;;  %v1028_v57 = vunpack.i.l.bf16 %v1027_v55 }
  0x89   : > { %v417_v58 = vsel %vm416_vm4, %v410_v54, %v1028_v57  ;;  %v418_v59 = vsel %vm416_vm4, %v411_v53, %v1029_v56 }
  0x8a   : > { %v423_v60 = vpack.c.bf16 %v418_v59, %v417_v58 }
  0x8c   : > { %873 = vmatmul.msk.bf16.vlgmr.msra.gmra.mxu0 %vm438_vm5, %v423_v60 }
  0x94   : > { %v1002_v61 = vpop.permute.xlu0 %1001 }
  0x95   : > { %v1004_v62 = vunpack.i.h.bf16 %v1002_v61  ;;  %v1003_v63 = vunpack.i.l.bf16 %v1002_v61 }
  0x97   : > { %v413_v6 = vsel %vm409_vm3, %v1264_v1, %v1004_v62  ;;  %v412_v7 = vsel %vm409_vm3, %v1262_v0, %v1003_v63 }
  0x98   : > { %v1012_v3 = vpop.permute.xlu1 %1011 }
  0x99   : > { %v1014_v11 = vunpack.i.h.bf16 %v1012_v3  ;;  %v1013_v12 = vunpack.i.l.bf16 %v1012_v3 }
  0x9b   : > { %v415_v16 = vsel %vm409_vm3, %v1277_v18, %v1014_v11  ;;  %v414_v1 = vsel %vm409_vm3, %v1275_v17, %v1013_v12 }
  0x9c   : > { %v1007_v2 = vpop.permute.xlu0 %1006 }
  0x9d   : > { %v1009_v4 = vunpack.i.h.bf16 %v1007_v2  ;;  %v1008_v5 = vunpack.i.l.bf16 %v1007_v2 }
  0x9f   : > { %v419_v8 = vsel %vm416_vm4, %v412_v7, %v1008_v5  ;;  %v420_v9 = vsel %vm416_vm4, %v413_v6, %v1009_v4 }
  0xa0   : > { %v424_v10 = vpack.c.bf16 %v420_v9, %v419_v8  ;;  %v1017_v13 = vpop.permute.xlu1 %1016 }
  0xa1   : > { %v1019_v14 = vunpack.i.h.bf16 %v1017_v13  ;;  %v1018_v15 = vunpack.i.l.bf16 %v1017_v13 }
  0xa2   : > { %874 = vmatmul.msk.bf16.vlgmr.msra.gmra.mxu3 %vm438_vm5, %v424_v10 }
  0xa3   : > { %v421_v0 = vsel %vm416_vm4, %v414_v1, %v1018_v15  ;;  %v422_v19 = vsel %vm416_vm4, %v415_v16, %v1019_v14 }
  0xa4   : > { %v425_v20 = vpack.c.bf16 %v422_v19, %v421_v0 }
  0xb2   : > { %875 = vmatmul.msk.bf16.gmra.mxu3 %vm438_vm5, %v425_v20 }
 0x109   : > { %v461_v23 = vpop.f32.mrf.mxu0 }
 0x10a   : > { %v480_v18 = vmul.f32 %v1060_v21, %v461_v23 }
 0x10c   : > { %v490_v24 = vadd.f32 %v1061_v22, %v480_v18 }
 0x10e   : > { %v496_v25 = vmax.f32 %v490_v24, 0.0 }
 0x110   : > { %v521_v26 = vrot.slane %v496_v25, 7 }
 0x111   : > { %v463_v17 = vpop.f32.mrf.mxu0 }
 0x112   : > { %v481_v27 = vmul.f32 %v1060_v21, %v463_v17  ;;  %v1334_v29 = vsel %vm520_vm6, 0.0, %v521_v26 }
 0x113   : > { %v551_v33 = vrot.slane %v1334_v29, 1  ;;  %v584_v23 = vrot.slane %v1334_v29, 2 }
 0x114   : > { %v491_v28 = vadd.f32 %v1061_v22, %v481_v27 }
 0x116   : > { %v497_v30 = vmax.f32 %v491_v28, 0.0 }
 0x118   : > { %v908_v31 = vpack.c.bf16 %v497_v30, %v496_v25  ;;  %v522_v32 = vrot.slane %v497_v30, 7 }
 0x11a   : > { %909 = vst [vmem:[%s1339_s21] sm:$0xff] %v908_v31   ;;  %v1343_v34 = vsel %vm520_vm6, %v521_v26, %v522_v32  ;;  %v1346_v35 = vsel %vm520_vm6, %v522_v32, 0.0 }
 0x11b   : > { %v554_v36 = vrot.slane %v1346_v35, 1  ;;  %v552_v37 = vrot.slane %v1343_v34, 1  ;;  %v587_v25 = vrot.slane %v1346_v35, 2  ;;  %v585_v27 = vrot.slane %v1343_v34, 2 }
 0x11d   : > { %v553_v38 = vsel %vm341_vm0, %v551_v33, %v552_v37  ;;  %v555_v39 = vsel %vm341_vm0, %v552_v37, %v554_v36  ;;  %v586_v32 = vsel %vm375_vm1, %v584_v23, %v585_v27  ;;  %v588_v33 = vsel %vm375_vm1, %v585_v27, %v587_v25  ;;  %v900_v37 = vld [vmem:[%s1484_s4 + $0x10] sm:$0xff] }
 0x11e   : > { %v1030_v40 = vpack.i.bf16 %v555_v39, %v553_v38  ;;  %v1050_v36 = vpack.i.bf16 %v588_v33, %v586_v32  ;;  %944 = vmatpush.bf16.msra.mxu2 %v900_v37  ;;  %672 = vmatpush.bf16.msrb.mxu0 %v900_v37  ;;  %v899_v38 = vld [vmem:[%s1484_s4 + $0x8] sm:$0xff]  ;;  %v898_v39 = vld [vmem:[%s1484_s4] sm:$0xff] }
 0x11f   : > { %943 = vmatpush.bf16.msra.mxu1 %v900_v37 }
 0x120   : > { %1031 = vrot.lane.b32.xlu2 %v1030_v40, %s1161_s23 }
 0x122   : > { %946 = vmatpush.bf16.msra.mxu2 %v899_v38  ;;  %673 = vmatpush.bf16.msrb.mxu0 %v899_v38 }
 0x123   : > { %945 = vmatpush.bf16.msra.mxu1 %v899_v38 }
 0x125   : > { %v466_v41 = vpop.f32.mrf.mxu3 }
 0x126   : > { %v482_v42 = vmul.f32 %v1060_v21, %v466_v41  ;;  %948 = vmatpush.bf16.msra.mxu2 %v898_v39  ;;  %674 = vmatpush.bf16.msrb.mxu0 %v898_v39 }
 0x127   : > { %947 = vmatpush.bf16.msra.mxu1 %v898_v39 }
 0x128   : > { %v492_v43 = vadd.f32 %v1061_v22, %v482_v42 }
 0x12a   : > { %v498_v44 = vmax.f32 %v492_v43, 0.0 }
 0x12c   : > { %v524_v47 = vrot.slane %v498_v44, 7 }
 0x12d   : > { %v468_v45 = vpop.f32.mrf.mxu3 }
 0x12e   : > { %v483_v46 = vmul.f32 %v1060_v21, %v468_v45  ;;  %v1354_v50 = vsel %vm520_vm6, 0.0, %v524_v47 }
 0x12f   : > { %v589_v57 = vrot.slane %v1354_v50, 2  ;;  %v556_v28 = vrot.slane %v1354_v50, 1 }
 0x130   : > { %v493_v48 = vadd.f32 %v1061_v22, %v483_v46 }
 0x132   : > { %v499_v49 = vmax.f32 %v493_v48, 0.0 }
 0x134   : > { %v913_v51 = vpack.c.bf16 %v499_v49, %v498_v44  ;;  %v525_v52 = vrot.slane %v499_v49, 7 }
 0x135   : > { %v471_v53 = vpop.f32.mrf.mxu3 }
 0x136   : > { %935 = vst [vmem:[%s1339_s21 + $0x8] sm:$0xff] %v913_v51   ;;  %v1358_v54 = vsel %vm520_vm6, %v524_v47, %v525_v52  ;;  %v543_v55 = vsel %vm520_vm6, %v525_v52, 0.0  ;;  %v484_v56 = vmul.f32 %v1060_v21, %v471_v53 }
 0x137   : > { %v592_v58 = vrot.slane %v543_v55, 2  ;;  %v590_v59 = vrot.slane %v1358_v54, 2  ;;  %v559_v17 = vrot.slane %v543_v55, 1  ;;  %v557_v26 = vrot.slane %v1358_v54, 1 }
 0x138   : > { %v494_v60 = vadd.f32 %v1061_v22, %v484_v56 }
 0x139   : > { %v591_v61 = vsel %vm375_vm1, %v589_v57, %v590_v59  ;;  %v593_v62 = vsel %vm375_vm1, %v590_v59, %v592_v58  ;;  %v558_v30 = vsel %vm341_vm0, %v556_v28, %v557_v26  ;;  %v560_v31 = vsel %vm341_vm0, %v557_v26, %v559_v17 }
 0x13a   : > { %v1055_v63 = vpack.i.bf16 %v593_v62, %v591_v61  ;;  %v500_v2 = vmax.f32 %v494_v60, 0.0  ;;  %v1045_v35 = vpack.i.bf16 %v560_v31, %v558_v30 }
 0x13c   : > { %1056 = vrot.lane.b32.xlu2 %v1055_v63, %s1162_s22  ;;  %v527_v5 = vrot.slane %v500_v2, 7 }
 0x13d   : > { %v473_v3 = vpop.f32.mrf.mxu3 }
 0x13e   : > { %v485_v4 = vmul.f32 %v1060_v21, %v473_v3  ;;  %v541_v8 = vsel %vm520_vm6, 0.0, %v527_v5 }
 0x13f   : > { %v561_v11 = vrot.slane %v541_v8, 1  ;;  %v594_v12 = vrot.slane %v541_v8, 2 }
 0x140   : > { %v495_v6 = vadd.f32 %v1061_v22, %v485_v4 }
 0x142   : > { %v501_v7 = vmax.f32 %v495_v6, 0.0 }
 0x144   : > { %v918_v9 = vpack.c.bf16 %v501_v7, %v500_v2  ;;  %v528_v10 = vrot.slane %v501_v7, 7 }
 0x146   : > { %936 = vst [vmem:[%s1339_s21 + $0x10] sm:$0xff] %v918_v9   ;;  %v529_v13 = vsel %vm520_vm6, %v527_v5, %v528_v10  ;;  %v544_v14 = vsel %vm520_vm6, %v528_v10, 0.0 }
 0x147   : > { %v564_v15 = vrot.slane %v544_v14, 1  ;;  %v597_v16 = vrot.slane %v544_v14, 2  ;;  %v595_v1 = vrot.slane %v529_v13, 2  ;;  %v562_v0 = vrot.slane %v529_v13, 1 }
 0x149   : > { %v596_v19 = vsel %vm375_vm1, %v594_v12, %v595_v1  ;;  %v598_v20 = vsel %vm375_vm1, %v595_v1, %v597_v16  ;;  %v563_v21 = vsel %vm341_vm0, %v561_v11, %v562_v0  ;;  %v565_v22 = vsel %vm341_vm0, %v562_v0, %v564_v15 }
 0x14a   : > { %v1040_v18 = vpack.i.bf16 %v598_v20, %v596_v19  ;;  %v1035_v24 = vpack.i.bf16 %v565_v22, %v563_v21 }
 0x14c   : > { %1041 = vrot.lane.b32.xlu1 %v1040_v18, %s1162_s22  ;;  %1036 = vrot.lane.b32.xlu0 %v1035_v24, %s1161_s23 }
 0x154   : > { %1046 = vrot.lane.b32.xlu0 %v1045_v35, %s1161_s23  ;;  %1051 = vrot.lane.b32.xlu1 %v1050_v36, %s1162_s22  ;;  %s748_s23 = sshll.u32 %s1339_s21, 4  ;;  %s1084_s21 = scalar_lea.hbm %s1487_s7, 48  ;;  %s749_s23 = int_to_ptr.vmem [resolvable:$true] %s748_s23 }
 0x155   : > { %p1086_p1 = scmp.lt.s32.totalorder %s1084_s21, %s1080_s12 }
 0x157   : > { %p1087_p2 = por %p1086_p1, %p1085_p0 }
 0x159   : > { %p1088_p3 = pnand %p1087_p2, %p1083_p13 }
 0x17a   : > { %v1032_v40 = vpop.permute.xlu2 %1031 }
 0x17b   : > { %v1034_v53 = vunpack.i.h.bf16 %v1032_v40  ;;  %v1033_v55 = vunpack.i.l.bf16 %v1032_v40 }
 0x17d   : > { %v618_v63 = vsel %vm416_vm4, %v1343_v34, %v1034_v53  ;;  %v617_v2 = vsel %vm416_vm4, %v1334_v29, %v1033_v55 }
 0x196   : > { %v1057_v56 = vpop.permute.xlu2 %1056 }
 0x197   : > { %v1059_v3 = vunpack.i.h.bf16 %v1057_v56  ;;  %v1058_v4 = vunpack.i.l.bf16 %v1057_v56 }
 0x1be   : > { %v1042_v41 = vpop.permute.xlu1 %1041  ;;  %v1037_v42 = vpop.permute.xlu0 %1036 }
 0x1bf   : > { %v1044_v43 = vunpack.i.h.bf16 %v1042_v41  ;;  %v1043_v44 = vunpack.i.l.bf16 %v1042_v41  ;;  %v1039_v45 = vunpack.i.h.bf16 %v1037_v42  ;;  %v1038_v46 = vunpack.i.l.bf16 %v1037_v42 }
 0x1c1   : > { %v622_v47 = vsel %vm416_vm4, %v529_v13, %v1039_v45  ;;  %v621_v48 = vsel %vm416_vm4, %v541_v8, %v1038_v46 }
 0x1c2   : > { %v628_v49 = vsel %vm623_vm7, %v621_v48, %v1043_v44  ;;  %v629_v51 = vsel %vm623_vm7, %v622_v47, %v1044_v43 }
 0x1c3   : > { %v632_v52 = vpack.c.bf16 %v629_v51, %v628_v49 }
 0x1c5   : > { %890 = vmatmul.msk.bf16.vlgmr.msra.gmra.mxu2 %vm657_vm8, %v632_v52 }
 0x1c6   : > { %v1047_v57 = vpop.permute.xlu0 %1046  ;;  %v1052_v58 = vpop.permute.xlu1 %1051 }
 0x1c7   : > { %v1049_v59 = vunpack.i.h.bf16 %v1047_v57  ;;  %v1048_v60 = vunpack.i.l.bf16 %v1047_v57  ;;  %v1054_v61 = vunpack.i.h.bf16 %v1052_v58  ;;  %v1053_v62 = vunpack.i.l.bf16 %v1052_v58 }
 0x1c9   : > { %v620_v5 = vsel %vm416_vm4, %v1358_v54, %v1049_v59  ;;  %v619_v6 = vsel %vm416_vm4, %v1354_v50, %v1048_v60  ;;  %v624_v7 = vsel %vm623_vm7, %v617_v2, %v1053_v62  ;;  %v625_v8 = vsel %vm623_vm7, %v618_v63, %v1054_v61 }
 0x1ca   : > { %v630_v9 = vpack.c.bf16 %v625_v8, %v624_v7  ;;  %v626_v34 = vsel %vm623_vm7, %v619_v6, %v1058_v4  ;;  %v627_v29 = vsel %vm623_vm7, %v620_v5, %v1059_v3 }
 0x1cb   : > { %v631_v10 = vpack.c.bf16 %v627_v29, %v626_v34 }
 0x1cc   : > { %888 = vmatmul.msk.bf16.vlgmr.msrb.gmra.mxu0 %vm657_vm8, %v630_v9 }
 0x1cd   : > { %889 = vmatmul.msk.bf16.vlgmr.msra.gmra.mxu1 %vm657_vm8, %v631_v10 }
 0x1ce   : > { %1091 = shalt.err (!%p1088_p3)
}
 0x1cf   : > { %s1163_s18 = smov 64   ;;  %s1164_s22 = smov 4   ;;  %v1062_v54 = vld [vmem:[%s1485_s5] ss:$0 sm:$0xff] }
 0x1d0   : > { %951 = dma.vmem_to_hbm [thread:$0]  (%p1248_p5), %s749_s23, 384, %s751_s25, %s730_s26, %s1163_s18, %s1163_s18, %s1164_s22  }
 0x1d1   : > { %v1063_v14 = vld [vmem:[%s1486_s6] ss:$0 sm:$0xff]  ;;  %s765_s26 = scalar_lea.hbm %s1488_s8, %s939_s17  ;;  %s1496_s10 = smul.u32 24, %s1330_s19 }
 0x1d2   : > { %s768_s21 = sshll.u32 %s765_s26, 4  ;;  %s735_s9 = scalar_lea.sflag [#allocation5], %s1330_s19  ;;  %s769_s21 = int_to_ptr.hbm [resolvable:$true] %s768_s21 }
 0x1d3   : > { %s312_s12 = scalar_lea.vmem [#allocation4], %s1496_s10  ;;  %s1106_s17 = sshra.s32 %s769_s21, 4  ;;  %s1107_s17 = int_to_ptr.hbm [resolvable:$true] %s1106_s17 }
 0x1d4   : > { %s766_s13 = sshll.u32 %s312_s12, 4  ;;  %s1108_s24 = scalar_lea.hbm %s1107_s17, 24  ;;  %s767_s13 = int_to_ptr.vmem [resolvable:$true] %s766_s13 }
 0x1d5   : > { %p1109_p4 = scmp.ne.s32.totalorder %s1107_s17, %s1108_s24  ;;  %s1112_s1 = scalar_lea.hbm %s1488_s8, 48 }
 0x1d6   : > { %p1113_p9 = scmp.lt.s32.totalorder %s1107_s17, %s1488_s8  ;;  %p1114_p10 = scmp.lt.s32.totalorder %s1112_s1, %s1108_s24 }
 0x1d7   : > { %p1110_p7 = pnand %p1109_p4, %p1248_p5 }
 0x1d8   : > { %p1115_p11 = por %p1114_p10, %p1113_p9 }
 0x1d9   : > { %p1111_p8 = pneg %p1110_p7 }
 0x1db   : > { %p1116_p12 = pnand %p1115_p11, %p1111_p8 }
 0x248   : > { %v686_v50 = vpop.f32.mrf.mxu2 }
 0x249   : > { %v676_v11 = vpop.f32.mrf.mxu0  ;;  %v699_v13 = vmul.f32 %v1062_v54, %v686_v50 }
 0x24a   : > { %v681_v12 = vpop.f32.mrf.mxu1  ;;  %v695_v15 = vmul.f32 %v1062_v54, %v676_v11 }
 0x24b   : > { %v697_v16 = vmul.f32 %v1062_v54, %v681_v12  ;;  %v709_v0 = vadd.f32 %v1063_v14, %v699_v13 }
 0x24c   : > { %v705_v21 = vadd.f32 %v1063_v14, %v695_v15 }
 0x24d   : > { %v707_v18 = vadd.f32 %v1063_v14, %v697_v16  ;;  %v715_v26 = vmax.f32 %v709_v0, 0.0 }
 0x24e   : > { %v711_v30 = vmax.f32 %v705_v21, 0.0 }
 0x24f   : > { %v713_v32 = vmax.f32 %v707_v18, 0.0 }
 0x250   : > { %v688_v1 = vpop.f32.mrf.mxu2 }
 0x251   : > { %v700_v19 = vmul.f32 %v1062_v54, %v688_v1  ;;  %v678_v20 = vpop.f32.mrf.mxu0 }
 0x252   : > { %v696_v22 = vmul.f32 %v1062_v54, %v678_v20  ;;  %v683_v23 = vpop.f32.mrf.mxu1 }
 0x253   : > { %v710_v24 = vadd.f32 %v1063_v14, %v700_v19  ;;  %v698_v25 = vmul.f32 %v1062_v54, %v683_v23 }
 0x254   : > { %v706_v17 = vadd.f32 %v1063_v14, %v696_v22 }
 0x255   : > { %v716_v27 = vmax.f32 %v710_v24, 0.0  ;;  %v708_v28 = vadd.f32 %v1063_v14, %v698_v25 }
 0x256   : > { %v712_v31 = vmax.f32 %v706_v17, 0.0 }
 0x257   : > { %v933_v33 = vpack.c.bf16 %v716_v27, %v715_v26  ;;  %v714_v35 = vmax.f32 %v708_v28, 0.0 }
 0x258   : > { %v923_v36 = vpack.c.bf16 %v712_v31, %v711_v30 }
 0x259   : > { %938 = vst [vmem:[%s312_s12 + $0x10] sm:$0xff] %v933_v33   ;;  %v928_v37 = vpack.c.bf16 %v714_v35, %v713_v32 }
 0x25a   : > { %924 = vst [vmem:[%s312_s12] sm:$0xff] %v923_v36  }
 0x25b   : > { %937 = vst [vmem:[%s312_s12 + $0x8] sm:$0xff] %v928_v37  }
 0x25c   : > { %1119 = shalt.err (!%p1116_p12)
}
 0x25d   : > { %952 = dma.vmem_to_hbm [thread:$0]  (%p1248_p5), %s767_s13, 384, %s769_s21, %s735_s9, %s1163_s18, %s1163_s18, %s1164_s22  }
 0x25e PF: > { %p962_p13 = scmp.ge.s32.totalorder %s1158_s30, 2  ;;  %s783_s19 = sand.u32 1, %s1146_s27  }
 0x25f   : > { %s784_s26 = scalar_lea.sflag [#allocation3], %s783_s19 }
 0x260   : > { %p956_p0 = pnand %p962_p13, %p1252_p6 }
 0x262   : > { %p957_p1 = pneg %p956_p0 }
 0x264   : > { %1137 = dma.done.wait (%p957_p1), %s784_s26, 384  }
 0x265   : > { %1139 = vsyncadd (%p957_p1), %s784_s26, 4294966912  ;;  %s794_s10 = scalar_lea.sflag [#allocation5], %s783_s19 }
 0x266   : > { %1141 = dma.done.wait (%p957_p1), %s794_s10, 384  }
 0x267   : > { %1143 = vsyncadd (%p957_p1), %s794_s10, 4294966912  ;;  %p22_p5 = scmp.ge.s32.totalorder %s1235_s11, 4   ;;  %s1497_s27 = smov %s1150_s28 }
 0x268   : > { %s1498_s28 = smov %s1154_s29  ;;  %s1499_s29 = smov %s1246_s14 }
 0x269   : > { %s1500_s30 = smov %s1235_s11  ;;  %24 = sbr.rel (!%p22_p5) target bundleno = 8 (0x8), region = 100 }
 0x26e   :  { %800 = vsyncpa [#allocation3], 1 }
 0x26f   :  { %802 = vsyncpa [#allocation3 + $0x1], 1 }
 0x270   :  { %803 = vsyncpa [#allocation5], 1 }
 0x271   :  { %805 = vsyncpa [#allocation5 + $0x1], 1 }

</bundles_post_ra>
